<compile_context>
chip_gen: v7x
topology: tpu7x:2x2x1
jax: 0.10.0
libtpu: 0.0.40
codegen_flags: <defaults>
</compile_context>

<pallas_src>
import functools

import jax
import jax.numpy as jnp
from jax.experimental import pallas as pl
from jax.experimental.pallas import tpu as pltpu

LANE = 128
SUBLANE = 8


def _head_kernel(g_ref, a_ref, w_ref, wo_ref, out_ref):
    """g_ref: [Bp, G]; a_ref: [T*Bp, A] time-major (row = t*Bp + b);
    w_ref: [G+A+H+1, 4H] rows = [W_g^T; W_a^T; W_hh^T; bias];
    wo_ref: [H+1, Cp]   rows = [W_out^T (lane-padded); b_out (lane-padded)];
    out_ref: [Bp, Cp] (first C lanes valid)."""
    Bp, G = g_ref.shape
    A = a_ref.shape[1]
    H = wo_ref.shape[0] - 1
    H4 = w_ref.shape[1]                               # == 4*H
    T = a_ref.shape[0] // Bp                          # static python int

    # Static (8-aligned) row views into the packed weight slab: free.
    w_g = w_ref[0:G, :]                               # [G, 4H]
    w_a = w_ref[G:G + A, :]                           # [A, 4H]
    w_hh = w_ref[G + A:G + A + H, :]                  # [H, 4H]
    bias = w_ref[G + A + H:G + A + H + 1, :]          # [1, 4H]

    # ---- Hoisted, non-recurrent work (off the serial critical path) --------
    # Attr projection for ALL timesteps in one lane-dense MXU matmul.
    x_all = jnp.dot(a_ref[...], w_a, preferred_element_type=jnp.float32)    # [T*Bp,4H]
    # Graph-emb projection + bias, computed once, pre-added over all T slabs.
    gb = jnp.dot(g_ref[...], w_g, preferred_element_type=jnp.float32) + bias  # [Bp,4H]
    pre = x_all + jnp.concatenate([gb] * T, axis=0)                          # [T*Bp,4H]

    # Per-lane gate constants: sigmoid lanes (i, f, o) vs tanh lanes (g).
    # sigmoid(x) = 0.5 * (tanh(x / 2) + 1)  -> one tanh push covers all gates.
    lane = jax.lax.broadcasted_iota(jnp.int32, (Bp, H4), 1)
    is_g_lane = (lane >= 2 * H) & (lane < 3 * H)
    scale = jnp.where(is_g_lane, 1.0, 0.5).astype(jnp.float32)   # pre & post scale
    offset = jnp.where(is_g_lane, 0.0, 0.5).astype(jnp.float32)  # post offset

    # ---- LSTM recurrence: h/c live in vregs, fully unrolled (static T) -----
    h = jnp.zeros((Bp, H), jnp.float32)
    c = jnp.zeros((Bp, H), jnp.float32)
    for t in range(T):                                # static unroll
        gates = pre[t * Bp:(t + 1) * Bp, :] + jnp.dot(
            h, w_hh, preferred_element_type=jnp.float32)          # [Bp, 4H]
        act = jnp.tanh(gates * scale) * scale + offset            # all 4 gates
        i_g = act[:, 0 * H:1 * H]                     # PyTorch gate order i,f,g,o
        f_g = act[:, 1 * H:2 * H]
        g_g = act[:, 2 * H:3 * H]
        o_g = act[:, 3 * H:4 * H]
        c = f_g * c + i_g * g_g
        h = o_g * jnp.tanh(c)

    # ---- Lane-dense classifier ----------------------------------------------
    w_out = wo_ref[0:H, :]                            # [H, Cp]
    b_out = wo_ref[H:H + 1, :]                        # [1, Cp]
    logits = jnp.dot(h, w_out, preferred_element_type=jnp.float32) + b_out
    out_ref[...] = logits.astype(out_ref.dtype)


def pack_params(params, g_dim):
    """One-time packing of LSTMHead params for the kernel (call outside jit)."""
    w_ihT, w_hhT, bias, w_outT, b_out = params
    H, H4 = w_hhT.shape
    C = w_outT.shape[1]
    Cp = max(LANE, -(-C // LANE) * LANE)
    # Rows: [W_g^T (G); W_a^T (A); W_hh^T (H); bias (1)]  -> one VMEM slab.
    w_pack = jnp.concatenate(
        [w_ihT[:g_dim], w_ihT[g_dim:], w_hhT, bias.reshape(1, H4)],
        axis=0).astype(jnp.float32)
    # Classifier weights + bias, zero-padded to a lane-dense 128-wide slab.
    wo_pack = jnp.zeros((H + 1, Cp), jnp.float32)
    wo_pack = wo_pack.at[:H, :C].set(w_outT.astype(jnp.float32))
    wo_pack = wo_pack.at[H, :C].set(b_out.reshape(-1).astype(jnp.float32))
    return w_pack, wo_pack


@functools.partial(jax.jit, static_argnames=("num_classes",))
def head_wrapper_forward(g_emb, attr_seq, w_pack, wo_pack, *, num_classes):
    """g_emb: [B, G], attr_seq: [B, T, A]  ->  logits [B, num_classes]."""
    B, T, A = attr_seq.shape
    Bp = max(SUBLANE, -(-B // SUBLANE) * SUBLANE)     # pad batch to sublane group
    Cp = wo_pack.shape[1]

    g_pad = jnp.pad(g_emb.astype(jnp.float32), ((0, Bp - B), (0, 0)))
    a_pad = jnp.pad(attr_seq.astype(jnp.float32), ((0, Bp - B), (0, 0), (0, 0)))
    # Time-major flattened attrs: row = t*Bp + b (each slab = one vreg tile).
    attr_flat = jnp.transpose(a_pad, (1, 0, 2)).reshape(T * Bp, A)

    vmem = pl.BlockSpec(memory_space=pltpu.MemorySpace.VMEM)
    out = pl.pallas_call(
        _head_kernel,
        out_shape=jax.ShapeDtypeStruct((Bp, Cp), jnp.float32),
        in_specs=[vmem] * 4,
        out_specs=vmem,
    )(g_pad, attr_flat, w_pack, wo_pack)
    return out[:B, :num_classes]


def reference_forward(g_emb, attr_seq, params):
    """Pure-JAX replica of HeadWrapper(LSTMHead) forward for verification."""
    w_ihT, w_hhT, bias, w_outT, b_out = params
    B, T, A = attr_seq.shape
    H = w_hhT.shape[0]
    g_rep = jnp.broadcast_to(g_emb[:, None, :], (B, T, g_emb.shape[1]))
    seq = jnp.concatenate([g_rep, attr_seq], axis=-1)
    h = jnp.zeros((B, H), jnp.float32)
    c = jnp.zeros((B, H), jnp.float32)
    for t in range(T):
        gates = seq[:, t, :] @ w_ihT + h @ w_hhT + bias
        i_g = jax.nn.sigmoid(gates[:, 0 * H:1 * H])
        f_g = jax.nn.sigmoid(gates[:, 1 * H:2 * H])
        g_g = jnp.tanh(gates[:, 2 * H:3 * H])
        o_g = jax.nn.sigmoid(gates[:, 3 * H:4 * H])
        c = f_g * c + i_g * g_g
        h = o_g * jnp.tanh(c)
    return h @ w_outT + b_out


if __name__ == "__main__":
    # Small shapes consistent with the module: B=2, T=8, g_dim=16, a_dim=16.
    B, T, G, A = 2, 8, 16, 16
    H, C = 32, 8                                       # LSTM hidden, num classes
    D = G + A

    key = jax.random.PRNGKey(0)
    k_g, k_a, k1, k2, k3, k4, k5 = jax.random.split(key, 7)

    g_emb = jax.random.normal(k_g, (B, G), jnp.float32)
    attr_seq = jax.random.normal(k_a, (B, T, A), jnp.float32)

    # Deterministic synthetic LSTMHead parameters (PyTorch gate order i,f,g,o),
    # stored pre-transposed.
    scale = 0.1
    w_ihT = scale * jax.random.normal(k1, (D, 4 * H), jnp.float32)     # W_ih^T
    w_hhT = scale * jax.random.normal(k2, (H, 4 * H), jnp.float32)     # W_hh^T
    bias = scale * jax.random.normal(k3, (1, 4 * H), jnp.float32)      # b_ih + b_hh
    w_outT = scale * jax.random.normal(k4, (H, C), jnp.float32)        # classifier W^T
    b_out = scale * jax.random.normal(k5, (1, C), jnp.float32)
    params = (w_ihT, w_hhT, bias, w_outT, b_out)

    # One-time parameter packing (done offline in a real deployment).
    w_pack, wo_pack = pack_params(params, g_dim=G)

    logits = head_wrapper_forward(g_emb, attr_seq, w_pack, wo_pack, num_classes=C)
    logits = jax.block_until_ready(logits)

    ref = reference_forward(g_emb, attr_seq, params)
    assert logits.shape == (B, C)
    assert jnp.allclose(logits, ref, atol=1e-4, rtol=1e-4), "mismatch vs reference"

    print("KERNEL_OK")
</pallas_src>

<mosaic_0001>
module attributes {stable_mosaic.version = 11 : i64} {
  func.func @_head_kernel(%arg0: memref<8x16xf32, #tpu.memory_space<vmem>>, %arg1: memref<64x16xf32, #tpu.memory_space<vmem>>, %arg2: memref<65x128xf32, #tpu.memory_space<vmem>>, %arg3: memref<33x128xf32, #tpu.memory_space<vmem>>, %arg4: memref<8x128xf32, #tpu.memory_space<vmem>>) attributes {dimension_semantics = [], scalar_prefetch = 0 : i64, scratch_operands = 0 : i64, tpu.core_type = #tpu.core_type<tc>} {
    %c0 = arith.constant 0 : index
    %c0_0 = arith.constant 0 : index
    %0 = vector.load %arg2[%c0, %c0_0] : memref<65x128xf32, #tpu.memory_space<vmem>>, vector<16x128xf32>
    %c16 = arith.constant 16 : index
    %c0_1 = arith.constant 0 : index
    %1 = vector.load %arg2[%c16, %c0_1] : memref<65x128xf32, #tpu.memory_space<vmem>>, vector<16x128xf32>
    %c32 = arith.constant 32 : index
    %c0_2 = arith.constant 0 : index
    %2 = vector.load %arg2[%c32, %c0_2] : memref<65x128xf32, #tpu.memory_space<vmem>>, vector<32x128xf32>
    %c64 = arith.constant 64 : index
    %c0_3 = arith.constant 0 : index
    %3 = vector.load %arg2[%c64, %c0_3] : memref<65x128xf32, #tpu.memory_space<vmem>>, vector<1x128xf32>
    %c0_4 = arith.constant 0 : index
    %c0_5 = arith.constant 0 : index
    %4 = vector.load %arg1[%c0_4, %c0_5] : memref<64x16xf32, #tpu.memory_space<vmem>>, vector<64x16xf32>
    %cst = arith.constant dense<0.000000e+00> : vector<64x128xf32>
    %5 = tpu.matmul %4, %1, %cst {dimension_numbers = #tpu.dot_dimension_numbers<[1], [0], [0], [1], [0, 0, 1, 1], [], []>} : vector<64x16xf32>, vector<16x128xf32>, vector<64x128xf32> -> vector<64x128xf32>
    %c0_6 = arith.constant 0 : index
    %c0_7 = arith.constant 0 : index
    %6 = vector.load %arg0[%c0_6, %c0_7] : memref<8x16xf32, #tpu.memory_space<vmem>>, vector<8x16xf32>
    %cst_8 = arith.constant dense<0.000000e+00> : vector<8x128xf32>
    %7 = tpu.matmul %6, %0, %cst_8 {dimension_numbers = #tpu.dot_dimension_numbers<[1], [0], [0], [1], [0, 0, 1, 1], [], []>} : vector<8x16xf32>, vector<16x128xf32>, vector<8x128xf32> -> vector<8x128xf32>
    %8 = vector.broadcast %3 : vector<1x128xf32> to vector<8x128xf32>
    %9 = arith.addf %7, %8 : vector<8x128xf32>
    %10 = tpu.concatenate %9, %9, %9, %9, %9, %9, %9, %9 in 0 : vector<8x128xf32>, vector<8x128xf32>, vector<8x128xf32>, vector<8x128xf32>, vector<8x128xf32>, vector<8x128xf32>, vector<8x128xf32>, vector<8x128xf32> -> vector<64x128xf32>
    %11 = arith.addf %5, %10 : vector<64x128xf32>
    %12 = tpu.iota {dimensions = array<i32: 1>} : vector<8x128xi32>
    %c64_i32 = arith.constant 64 : i32
    %13 = vector.broadcast %c64_i32 : i32 to vector<8x128xi32>
    %14 = arith.cmpi sge, %12, %13 : vector<8x128xi32>
    %c96_i32 = arith.constant 96 : i32
    %15 = vector.broadcast %c96_i32 : i32 to vector<8x128xi32>
    %16 = arith.cmpi slt, %12, %15 : vector<8x128xi32>
    %17 = arith.andi %14, %16 : vector<8x128xi1>
    %cst_9 = arith.constant 1.000000e+00 : f32
    %cst_10 = arith.constant 5.000000e-01 : f32
    %18 = vector.broadcast %cst_9 : f32 to vector<8x128xf32>
    %19 = vector.broadcast %cst_10 : f32 to vector<8x128xf32>
    %20 = arith.select %17, %18, %19 : vector<8x128xi1>, vector<8x128xf32>
    %cst_11 = arith.constant 0.000000e+00 : f32
    %cst_12 = arith.constant 5.000000e-01 : f32
    %21 = vector.broadcast %cst_11 : f32 to vector<8x128xf32>
    %22 = vector.broadcast %cst_12 : f32 to vector<8x128xf32>
    %23 = arith.select %17, %21, %22 : vector<8x128xi1>, vector<8x128xf32>
    %cst_13 = arith.constant 0.000000e+00 : f32
    %24 = vector.broadcast %cst_13 : f32 to vector<8x32xf32>
    %cst_14 = arith.constant 0.000000e+00 : f32
    %25 = vector.broadcast %cst_14 : f32 to vector<8x32xf32>
    %26 = vector.extract_strided_slice %11 {offsets = [0, 0], sizes = [8, 128], strides = [1, 1]} : vector<64x128xf32> to vector<8x128xf32>
    %cst_15 = arith.constant dense<0.000000e+00> : vector<8x128xf32>
    %27 = tpu.matmul %24, %2, %cst_15 {dimension_numbers = #tpu.dot_dimension_numbers<[1], [0], [0], [1], [0, 0, 1, 1], [], []>} : vector<8x32xf32>, vector<32x128xf32>, vector<8x128xf32> -> vector<8x128xf32>
    %28 = arith.addf %26, %27 : vector<8x128xf32>
    %29 = arith.mulf %28, %20 : vector<8x128xf32>
    %30 = math.tanh %29 : vector<8x128xf32>
    %31 = arith.mulf %30, %20 : vector<8x128xf32>
    %32 = arith.addf %31, %23 : vector<8x128xf32>
    %33 = vector.extract_strided_slice %32 {offsets = [0, 0], sizes = [8, 32], strides = [1, 1]} : vector<8x128xf32> to vector<8x32xf32>
    %34 = vector.extract_strided_slice %32 {offsets = [0, 32], sizes = [8, 32], strides = [1, 1]} : vector<8x128xf32> to vector<8x32xf32>
    %35 = vector.extract_strided_slice %32 {offsets = [0, 64], sizes = [8, 32], strides = [1, 1]} : vector<8x128xf32> to vector<8x32xf32>
    %36 = vector.extract_strided_slice %32 {offsets = [0, 96], sizes = [8, 32], strides = [1, 1]} : vector<8x128xf32> to vector<8x32xf32>
    %37 = arith.mulf %34, %25 : vector<8x32xf32>
    %38 = arith.mulf %33, %35 : vector<8x32xf32>
    %39 = arith.addf %37, %38 : vector<8x32xf32>
    %40 = math.tanh %39 : vector<8x32xf32>
    %41 = arith.mulf %36, %40 : vector<8x32xf32>
    %42 = vector.extract_strided_slice %11 {offsets = [8, 0], sizes = [8, 128], strides = [1, 1]} : vector<64x128xf32> to vector<8x128xf32>
    %cst_16 = arith.constant dense<0.000000e+00> : vector<8x128xf32>
    %43 = tpu.matmul %41, %2, %cst_16 {dimension_numbers = #tpu.dot_dimension_numbers<[1], [0], [0], [1], [0, 0, 1, 1], [], []>} : vector<8x32xf32>, vector<32x128xf32>, vector<8x128xf32> -> vector<8x128xf32>
    %44 = arith.addf %42, %43 : vector<8x128xf32>
    %45 = arith.mulf %44, %20 : vector<8x128xf32>
    %46 = math.tanh %45 : vector<8x128xf32>
    %47 = arith.mulf %46, %20 : vector<8x128xf32>
    %48 = arith.addf %47, %23 : vector<8x128xf32>
    %49 = vector.extract_strided_slice %48 {offsets = [0, 0], sizes = [8, 32], strides = [1, 1]} : vector<8x128xf32> to vector<8x32xf32>
    %50 = vector.extract_strided_slice %48 {offsets = [0, 32], sizes = [8, 32], strides = [1, 1]} : vector<8x128xf32> to vector<8x32xf32>
    %51 = vector.extract_strided_slice %48 {offsets = [0, 64], sizes = [8, 32], strides = [1, 1]} : vector<8x128xf32> to vector<8x32xf32>
    %52 = vector.extract_strided_slice %48 {offsets = [0, 96], sizes = [8, 32], strides = [1, 1]} : vector<8x128xf32> to vector<8x32xf32>
    %53 = arith.mulf %50, %39 : vector<8x32xf32>
    %54 = arith.mulf %49, %51 : vector<8x32xf32>
    %55 = arith.addf %53, %54 : vector<8x32xf32>
    %56 = math.tanh %55 : vector<8x32xf32>
    %57 = arith.mulf %52, %56 : vector<8x32xf32>
    %58 = vector.extract_strided_slice %11 {offsets = [16, 0], sizes = [8, 128], strides = [1, 1]} : vector<64x128xf32> to vector<8x128xf32>
    %cst_17 = arith.constant dense<0.000000e+00> : vector<8x128xf32>
    %59 = tpu.matmul %57, %2, %cst_17 {dimension_numbers = #tpu.dot_dimension_numbers<[1], [0], [0], [1], [0, 0, 1, 1], [], []>} : vector<8x32xf32>, vector<32x128xf32>, vector<8x128xf32> -> vector<8x128xf32>
    %60 = arith.addf %58, %59 : vector<8x128xf32>
    %61 = arith.mulf %60, %20 : vector<8x128xf32>
    %62 = math.tanh %61 : vector<8x128xf32>
    %63 = arith.mulf %62, %20 : vector<8x128xf32>
    %64 = arith.addf %63, %23 : vector<8x128xf32>
    %65 = vector.extract_strided_slice %64 {offsets = [0, 0], sizes = [8, 32], strides = [1, 1]} : vector<8x128xf32> to vector<8x32xf32>
    %66 = vector.extract_strided_slice %64 {offsets = [0, 32], sizes = [8, 32], strides = [1, 1]} : vector<8x128xf32> to vector<8x32xf32>
    %67 = vector.extract_strided_slice %64 {offsets = [0, 64], sizes = [8, 32], strides = [1, 1]} : vector<8x128xf32> to vector<8x32xf32>
    %68 = vector.extract_strided_slice %64 {offsets = [0, 96], sizes = [8, 32], strides = [1, 1]} : vector<8x128xf32> to vector<8x32xf32>
    %69 = arith.mulf %66, %55 : vector<8x32xf32>
    %70 = arith.mulf %65, %67 : vector<8x32xf32>
    %71 = arith.addf %69, %70 : vector<8x32xf32>
    %72 = math.tanh %71 : vector<8x32xf32>
    %73 = arith.mulf %68, %72 : vector<8x32xf32>
    %74 = vector.extract_strided_slice %11 {offsets = [24, 0], sizes = [8, 128], strides = [1, 1]} : vector<64x128xf32> to vector<8x128xf32>
    %cst_18 = arith.constant dense<0.000000e+00> : vector<8x128xf32>
    %75 = tpu.matmul %73, %2, %cst_18 {dimension_numbers = #tpu.dot_dimension_numbers<[1], [0], [0], [1], [0, 0, 1, 1], [], []>} : vector<8x32xf32>, vector<32x128xf32>, vector<8x128xf32> -> vector<8x128xf32>
    %76 = arith.addf %74, %75 : vector<8x128xf32>
    %77 = arith.mulf %76, %20 : vector<8x128xf32>
    %78 = math.tanh %77 : vector<8x128xf32>
    %79 = arith.mulf %78, %20 : vector<8x128xf32>
    %80 = arith.addf %79, %23 : vector<8x128xf32>
    %81 = vector.extract_strided_slice %80 {offsets = [0, 0], sizes = [8, 32], strides = [1, 1]} : vector<8x128xf32> to vector<8x32xf32>
    %82 = vector.extract_strided_slice %80 {offsets = [0, 32], sizes = [8, 32], strides = [1, 1]} : vector<8x128xf32> to vector<8x32xf32>
    %83 = vector.extract_strided_slice %80 {offsets = [0, 64], sizes = [8, 32], strides = [1, 1]} : vector<8x128xf32> to vector<8x32xf32>
    %84 = vector.extract_strided_slice %80 {offsets = [0, 96], sizes = [8, 32], strides = [1, 1]} : vector<8x128xf32> to vector<8x32xf32>
    %85 = arith.mulf %82, %71 : vector<8x32xf32>
    %86 = arith.mulf %81, %83 : vector<8x32xf32>
    %87 = arith.addf %85, %86 : vector<8x32xf32>
    %88 = math.tanh %87 : vector<8x32xf32>
    %89 = arith.mulf %84, %88 : vector<8x32xf32>
    %90 = vector.extract_strided_slice %11 {offsets = [32, 0], sizes = [8, 128], strides = [1, 1]} : vector<64x128xf32> to vector<8x128xf32>
    %cst_19 = arith.constant dense<0.000000e+00> : vector<8x128xf32>
    %91 = tpu.matmul %89, %2, %cst_19 {dimension_numbers = #tpu.dot_dimension_numbers<[1], [0], [0], [1], [0, 0, 1, 1], [], []>} : vector<8x32xf32>, vector<32x128xf32>, vector<8x128xf32> -> vector<8x128xf32>
    %92 = arith.addf %90, %91 : vector<8x128xf32>
    %93 = arith.mulf %92, %20 : vector<8x128xf32>
    %94 = math.tanh %93 : vector<8x128xf32>
    %95 = arith.mulf %94, %20 : vector<8x128xf32>
    %96 = arith.addf %95, %23 : vector<8x128xf32>
    %97 = vector.extract_strided_slice %96 {offsets = [0, 0], sizes = [8, 32], strides = [1, 1]} : vector<8x128xf32> to vector<8x32xf32>
    %98 = vector.extract_strided_slice %96 {offsets = [0, 32], sizes = [8, 32], strides = [1, 1]} : vector<8x128xf32> to vector<8x32xf32>
    %99 = vector.extract_strided_slice %96 {offsets = [0, 64], sizes = [8, 32], strides = [1, 1]} : vector<8x128xf32> to vector<8x32xf32>
    %100 = vector.extract_strided_slice %96 {offsets = [0, 96], sizes = [8, 32], strides = [1, 1]} : vector<8x128xf32> to vector<8x32xf32>
    %101 = arith.mulf %98, %87 : vector<8x32xf32>
    %102 = arith.mulf %97, %99 : vector<8x32xf32>
    %103 = arith.addf %101, %102 : vector<8x32xf32>
    %104 = math.tanh %103 : vector<8x32xf32>
    %105 = arith.mulf %100, %104 : vector<8x32xf32>
    %106 = vector.extract_strided_slice %11 {offsets = [40, 0], sizes = [8, 128], strides = [1, 1]} : vector<64x128xf32> to vector<8x128xf32>
    %cst_20 = arith.constant dense<0.000000e+00> : vector<8x128xf32>
    %107 = tpu.matmul %105, %2, %cst_20 {dimension_numbers = #tpu.dot_dimension_numbers<[1], [0], [0], [1], [0, 0, 1, 1], [], []>} : vector<8x32xf32>, vector<32x128xf32>, vector<8x128xf32> -> vector<8x128xf32>
    %108 = arith.addf %106, %107 : vector<8x128xf32>
    %109 = arith.mulf %108, %20 : vector<8x128xf32>
    %110 = math.tanh %109 : vector<8x128xf32>
    %111 = arith.mulf %110, %20 : vector<8x128xf32>
    %112 = arith.addf %111, %23 : vector<8x128xf32>
    %113 = vector.extract_strided_slice %112 {offsets = [0, 0], sizes = [8, 32], strides = [1, 1]} : vector<8x128xf32> to vector<8x32xf32>
    %114 = vector.extract_strided_slice %112 {offsets = [0, 32], sizes = [8, 32], strides = [1, 1]} : vector<8x128xf32> to vector<8x32xf32>
    %115 = vector.extract_strided_slice %112 {offsets = [0, 64], sizes = [8, 32], strides = [1, 1]} : vector<8x128xf32> to vector<8x32xf32>
    %116 = vector.extract_strided_slice %112 {offsets = [0, 96], sizes = [8, 32], strides = [1, 1]} : vector<8x128xf32> to vector<8x32xf32>
    %117 = arith.mulf %114, %103 : vector<8x32xf32>
    %118 = arith.mulf %113, %115 : vector<8x32xf32>
    %119 = arith.addf %117, %118 : vector<8x32xf32>
    %120 = math.tanh %119 : vector<8x32xf32>
    %121 = arith.mulf %116, %120 : vector<8x32xf32>
    %122 = vector.extract_strided_slice %11 {offsets = [48, 0], sizes = [8, 128], strides = [1, 1]} : vector<64x128xf32> to vector<8x128xf32>
    %cst_21 = arith.constant dense<0.000000e+00> : vector<8x128xf32>
    %123 = tpu.matmul %121, %2, %cst_21 {dimension_numbers = #tpu.dot_dimension_numbers<[1], [0], [0], [1], [0, 0, 1, 1], [], []>} : vector<8x32xf32>, vector<32x128xf32>, vector<8x128xf32> -> vector<8x128xf32>
    %124 = arith.addf %122, %123 : vector<8x128xf32>
    %125 = arith.mulf %124, %20 : vector<8x128xf32>
    %126 = math.tanh %125 : vector<8x128xf32>
    %127 = arith.mulf %126, %20 : vector<8x128xf32>
    %128 = arith.addf %127, %23 : vector<8x128xf32>
    %129 = vector.extract_strided_slice %128 {offsets = [0, 0], sizes = [8, 32], strides = [1, 1]} : vector<8x128xf32> to vector<8x32xf32>
    %130 = vector.extract_strided_slice %128 {offsets = [0, 32], sizes = [8, 32], strides = [1, 1]} : vector<8x128xf32> to vector<8x32xf32>
    %131 = vector.extract_strided_slice %128 {offsets = [0, 64], sizes = [8, 32], strides = [1, 1]} : vector<8x128xf32> to vector<8x32xf32>
    %132 = vector.extract_strided_slice %128 {offsets = [0, 96], sizes = [8, 32], strides = [1, 1]} : vector<8x128xf32> to vector<8x32xf32>
    %133 = arith.mulf %130, %119 : vector<8x32xf32>
    %134 = arith.mulf %129, %131 : vector<8x32xf32>
    %135 = arith.addf %133, %134 : vector<8x32xf32>
    %136 = math.tanh %135 : vector<8x32xf32>
    %137 = arith.mulf %132, %136 : vector<8x32xf32>
    %138 = vector.extract_strided_slice %11 {offsets = [56, 0], sizes = [8, 128], strides = [1, 1]} : vector<64x128xf32> to vector<8x128xf32>
    %cst_22 = arith.constant dense<0.000000e+00> : vector<8x128xf32>
    %139 = tpu.matmul %137, %2, %cst_22 {dimension_numbers = #tpu.dot_dimension_numbers<[1], [0], [0], [1], [0, 0, 1, 1], [], []>} : vector<8x32xf32>, vector<32x128xf32>, vector<8x128xf32> -> vector<8x128xf32>
    %140 = arith.addf %138, %139 : vector<8x128xf32>
    %141 = arith.mulf %140, %20 : vector<8x128xf32>
    %142 = math.tanh %141 : vector<8x128xf32>
    %143 = arith.mulf %142, %20 : vector<8x128xf32>
    %144 = arith.addf %143, %23 : vector<8x128xf32>
    %145 = vector.extract_strided_slice %144 {offsets = [0, 0], sizes = [8, 32], strides = [1, 1]} : vector<8x128xf32> to vector<8x32xf32>
    %146 = vector.extract_strided_slice %144 {offsets = [0, 32], sizes = [8, 32], strides = [1, 1]} : vector<8x128xf32> to vector<8x32xf32>
    %147 = vector.extract_strided_slice %144 {offsets = [0, 64], sizes = [8, 32], strides = [1, 1]} : vector<8x128xf32> to vector<8x32xf32>
    %148 = vector.extract_strided_slice %144 {offsets = [0, 96], sizes = [8, 32], strides = [1, 1]} : vector<8x128xf32> to vector<8x32xf32>
    %149 = arith.mulf %146, %135 : vector<8x32xf32>
    %150 = arith.mulf %145, %147 : vector<8x32xf32>
    %151 = arith.addf %149, %150 : vector<8x32xf32>
    %152 = math.tanh %151 : vector<8x32xf32>
    %153 = arith.mulf %148, %152 : vector<8x32xf32>
    %c0_23 = arith.constant 0 : index
    %c0_24 = arith.constant 0 : index
    %154 = vector.load %arg3[%c0_23, %c0_24] : memref<33x128xf32, #tpu.memory_space<vmem>>, vector<32x128xf32>
    %c32_25 = arith.constant 32 : index
    %c0_26 = arith.constant 0 : index
    %155 = vector.load %arg3[%c32_25, %c0_26] : memref<33x128xf32, #tpu.memory_space<vmem>>, vector<1x128xf32>
    %cst_27 = arith.constant dense<0.000000e+00> : vector<8x128xf32>
    %156 = tpu.matmul %153, %154, %cst_27 {dimension_numbers = #tpu.dot_dimension_numbers<[1], [0], [0], [1], [0, 0, 1, 1], [], []>} : vector<8x32xf32>, vector<32x128xf32>, vector<8x128xf32> -> vector<8x128xf32>
    %157 = vector.broadcast %155 : vector<1x128xf32> to vector<8x128xf32>
    %158 = arith.addf %156, %157 : vector<8x128xf32>
    %c0_28 = arith.constant 0 : index
    %c0_29 = arith.constant 0 : index
    %159 = vector.load %arg4[%c0_28, %c0_29] : memref<8x128xf32, #tpu.memory_space<vmem>>, vector<8x128xf32>
    tpu.vector_store %arg4[%c0_28, %c0_29], %158 {strides = array<i32>} : memref<8x128xf32, #tpu.memory_space<vmem>>, vector<8x128xf32>,
    return
  }
}

</mosaic_0001>

<bundles_post_ra>
// kernel: head_wrapper_forward.1
= control target key start
LH: loop header
LB: loop body
LE: loop exit
PB: predicated region body
PF: predicated region fallthrough
CT: control target
= control target key end

     0   :  { %vm39_vm0 = vcmask 130048   ;;  %v1411_v0 = vmov 0.0|0.0   ;;  %vm1412_vm1 = vmmov 0   ;;  %v1413_v4 = vmov 0.0   ;;  %s1677_s2 = inlined_call_operand.vmem [shape: f32[65,128], index: 2, kind: input, shape index: {}]   ;;  %s1678_s1 = inlined_call_operand.vmem [shape: f32[64,16], index: 1, kind: input, shape index: {}]   ;;  %s1679_s0 = inlined_call_operand.vmem [shape: f32[8,16], index: 0, kind: input, shape index: {}]   ;;  %s1680_s3 = inlined_call_operand.vmem [shape: f32[33,128], index: 3, kind: input, shape index: {}]   ;;  %s1681_s4 = inlined_call_operand.vmem [shape: f32[8,128], index: 4, kind: output, shape index: {}]  }
   0x1   :  { %1312 = vmatprep.subr.bf16.mxu0 %v1411_v0  ;;  %v17_v1 = vld [vmem:[%s1677_s2] sm:$0xff]  ;;  %v18_v2 = vld [vmem:[%s1677_s2 + $0x8] sm:$0xff]  ;;  %v19_v3 = vld [vmem:[%s1677_s2 + $0x10] sm:$0xff]  ;;  %1194 = vmatprep.mubr.msk.f32.mxu0 %vm1412_vm1, %v1413_v4  ;;  %v242_v23 = vlaneseq  ;;  %v1414_v38 = vmov 0.5   ;;  %vm249_vm5 = vcmask 261120  }
   0x2   :  { %v1313_v5 = vpack.c.bf16 %v18_v2, %v17_v1  ;;  %v20_v6 = vld [vmem:[%s1677_s2 + $0x18] sm:$0xff]  ;;  %v26_v7 = vld [vmem:[%s1678_s1] sm:$0xff]  ;;  %v22_v10 = vld [vmem:[%s1677_s2 + $0x28] sm:$0xff] }
   0x3   :  { %v1315_v8 = vpack.c.bf16 %v20_v6, %v19_v3  ;;  %1201 = vmatprep.mubr.msk.f32.mxu1 %vm39_vm0, %v26_v7  ;;  %v21_v9 = vld [vmem:[%s1677_s2 + $0x20] sm:$0xff]  ;;  %v23_v13 = vld [vmem:[%s1677_s2 + $0x30] sm:$0xff]  ;;  %v24_v14 = vld [vmem:[%s1677_s2 + $0x38] sm:$0xff]  ;;  %v243_v25 = vand.u32 127, %v242_v23 }
   0x4   :  { %1314 = vmatpush3.bf16.msra.mxu0 %v1313_v5  ;;  %v34_v11 = vld [vmem:[%s1679_s0] sm:$0xff]  ;;  %v1470_v12 = vpack.c.bf16 %v22_v10, %v21_v9  ;;  %v27_v15 = vld [vmem:[%s1678_s1 + $0x8] sm:$0xff]  ;;  %v28_v16 = vld [vmem:[%s1678_s1 + $0x10] sm:$0xff]  ;;  %v1488_v17 = vpack.c.bf16 %v24_v14, %v23_v13 }
   0x5   :  { %1316 = vmatprep.subr.bf16.mxu1 %v1315_v8  ;;  %1319 = vmatprep.subr.bf16.mxu0 %v1411_v0  ;;  %v29_v18 = vld [vmem:[%s1678_s1 + $0x18] sm:$0xff]  ;;  %v30_v19 = vld [vmem:[%s1678_s1 + $0x20] sm:$0xff]  ;;  %v31_v20 = vld [vmem:[%s1678_s1 + $0x28] sm:$0xff]  ;;  %vm244_vm2 = vcmp.ge.s32.totalorder %v243_v25, 64  ;;  %vm245_vm3 = vcmp.lt.s32.totalorder %v243_v25, 96 }
   0x6   :  { %1318 = vmatpush3.bf16.msra.mxu1 %v1315_v8  ;;  %v32_v21 = vld [vmem:[%s1678_s1 + $0x30] sm:$0xff]  ;;  %v33_v22 = vld [vmem:[%s1678_s1 + $0x38] sm:$0xff]  ;;  %v1113_v24 = vld [vmem:[%s1677_s2 + $0x40] ss:$0 sm:$0xff]  ;;  %s1415_s1 = smov 64   ;;  %s1416_s2 = smov 32  }
   0x7   :  { %1195 = vmatmul.mubr.msk.f32.vlgmr.msra.gmra.mrb[0].mxu0 %vm39_vm0, %v34_v11  ;;  %1331 = vmatprep.subr.bf16.mxu1 %v1411_v0  ;;  %vm1533_vm4 = vmand %vm244_vm2, %vm245_vm3 }
   0x8   :  { %1321 = vmatpush3.bf16.msra.mxu0 %v1470_v12  ;;  %1221 = vmatprep.mubr.msk.f32.mxu0 %vm1412_vm1, %v1413_v4  ;;  %v1543_v39 = vsel %vm1533_vm4, 1.0, %v1414_v38  ;;  %v1556_v53 = vsel %vm1533_vm4, 0.0, %v1414_v38 }
   0x9   :  { %1202 = vmatmul.mubr.msk.f32.vlgmr.msra.gmra.mrb[0].mxu1 %vm39_vm0, %v27_v15  ;;  %1322 = vmatprep.subr.bf16.mxu0 %v1411_v0 }
   0xa   :  { %1204 = vmatprep.mubr.msk.f32.mxu1 %vm39_vm0, %v28_v16  ;;  %1333 = vmatpush3.bf16.msra.mxu1 %v1470_v12 }
   0xb   :  { %1334 = vmatprep.subr.bf16.mxu1 %v1411_v0 }
   0xc   :  { %1324 = vmatpush3.bf16.msra.mxu0 %v1488_v17 }
   0xd   :  { %1205 = vmatmul.mubr.msk.f32.gmra.mrb[2].mxu1 %vm39_vm0, %v29_v18  ;;  %1325 = vmatprep.subr.bf16.mxu0 %v1411_v0 }
   0xe   :  { %1207 = vmatprep.mubr.msk.f32.mxu1 %vm39_vm0, %v30_v19  ;;  %1336 = vmatpush3.bf16.msra.mxu1 %v1488_v17 }
   0xf   :  { %1222 = vmatmul.mubr.f32.vlgmr.msra.gmra.mrb[2].mxu0 %v1413_v4  ;;  %1343 = vmatprep.subr.bf16.mxu1 %v1411_v0 }
  0x10   :  { %1327 = vmatpush3.bf16.msra.mxu0 %v1470_v12  ;;  %1232 = vmatprep.mubr.msk.f32.mxu0 %vm1412_vm1, %v1413_v4 }
  0x11   :  { %1208 = vmatmul.mubr.msk.f32.gmra.mrb[4].mxu1 %vm39_vm0, %v31_v20  ;;  %1328 = vmatprep.subr.bf16.mxu0 %v1411_v0 }
  0x12   :  { %1210 = vmatprep.mubr.msk.f32.mxu1 %vm39_vm0, %v32_v21 }
  0x14   :  { %1330 = vmatpush3.bf16.msra.mxu0 %v1488_v17 }
  0x15   :  { %1211 = vmatmul.mubr.msk.f32.gmra.mrb[6].mxu1 %vm39_vm0, %v33_v22  ;;  %1337 = vmatprep.subr.bf16.mxu0 %v1411_v0 }
  0x16   :  { %1243 = vmatprep.mubr.msk.f32.mxu1 %vm1412_vm1, %v1413_v4 }
  0xda   :  { %v109_v26 = vpop.f32.mrb[0].mxu0 }
  0xdb   :  { %v110_v27 = vadd.f32 %v1113_v24, %v109_v26  ;;  %v1196_v28 = vpop.f32.mrb[1].mxu0 }
  0xdc   :  { %v1203_v29 = vpop.f32.mrb[0].mxu1 }
  0xdd   :  { %v209_v30 = vadd.f32 %v1203_v29, %v110_v27  ;;  %v203_v31 = vpop.f32.mrb[1].mxu1 }
  0xde   :  { %v204_v32 = vadd.f32 %v203_v31, %v110_v27 }
  0xe0   :  { %v1206_v34 = vpop.f32.mrb[2].mxu1 }
  0xe1   :  { %v1537_v35 = vadd.f32 %v1206_v34, %v110_v27  ;;  %v213_v36 = vpop.f32.mrb[3].mxu1 }
  0xe2   :  { %v1539_v37 = vadd.f32 %v213_v36, %v110_v27  ;;  %v319_v40 = vpop.f32.mrb[2].mxu0 }
  0xe3   :  { %v323_v41 = vadd.f32 %v319_v40, %v204_v32  ;;  %v1223_v42 = vpop.f32.mrb[3].mxu0 }
  0xe4   :  { %v1209_v43 = vpop.f32.mrb[4].mxu1 }
  0xe5   :  { %v324_v44 = vmul.f32 %v323_v41, %v1543_v39  ;;  %v1546_v45 = vadd.f32 %v1209_v43, %v110_v27  ;;  %v223_v46 = vpop.f32.mrb[5].mxu1 }
  0xe6   :  { %v1548_v47 = vadd.f32 %v223_v46, %v110_v27 }
  0xe7   :  { %1379 = vtanh.f32 %v324_v44 }
  0xe8   :  { %v1212_v48 = vpop.f32.mrb[6].mxu1 }
  0xe9   :  { %v1550_v49 = vadd.f32 %v1212_v48, %v110_v27  ;;  %v233_v50 = vpop.f32.mrb[7].mxu1 }
  0xea   :  { %v1552_v51 = vadd.f32 %v233_v50, %v110_v27 }
  0xf1   :  { %v1380_v52 = vpop.eup %1379 }
  0xf2   :  { %v326_v54 = vmul.f32 %v1380_v52, %v1543_v39 }
  0xf4   :  { %v327_v55 = vadd.f32 %v326_v54, %v1556_v53 }
  0xf6   :  { %330 = vrot.lane.b32.xlu0 %v327_v55, %s1415_s1  ;;  %v328_v58 = vmul.f32 0.0, %v327_v55 }
 0x168   :  { %v331_v56 = vpop.permute.xlu0 %330 }
 0x169   :  { %v333_v57 = vmul.f32 %v331_v56, %v327_v55 }
 0x16b   :  { %335 = vrot.lane.b32.xlu0 %v333_v57, %s1416_s2 }
 0x1dd   :  { %v336_v59 = vpop.permute.xlu0 %335 }
 0x1de   :  { %v338_v60 = vadd.f32 %v336_v59, %v328_v58 }
 0x1e0   :  { %1381 = vtanh.f32 %v338_v60 }
 0x1ea   :  { %v1382_v61 = vpop.eup %1381 }
 0x1eb   :  { %341 = vrot.lane.b32.xlu1 %v1382_v61, %s1415_s1 }
 0x25d   :  { %v342_v62 = vpop.permute.xlu1 %341 }
 0x25e   :  { %v344_v63 = vmul.f32 %v342_v62, %v327_v55 }
 0x260   :  { %346 = vrot.lane.b32.xlu1 %v344_v63, %s1416_s2 }
 0x2d2   :  { %v347_v1 = vpop.permute.xlu1 %346 }
 0x2d3   :  { %1233 = vmatmul.mubr.msk.f32.vlgmr.msra.gmra.mrb[4].mxu0 %vm249_vm5, %v347_v1 }
 0x2d4   :  { %1339 = vmatpush3.bf16.msra.mxu0 %v1470_v12  ;;  %1254 = vmatprep.mubr.msk.f32.mxu0 %vm1412_vm1, %v1413_v4 }
 0x2d5   :  { %1340 = vmatprep.subr.bf16.mxu0 %v1411_v0 }
 0x2d8   :  { %1342 = vmatpush3.bf16.msra.mxu0 %v1488_v17 }
 0x2d9   :  { %1349 = vmatprep.subr.bf16.mxu0 %v1411_v0 }
 0x3a6   :  { %v416_v2 = vpop.f32.mrb[4].mxu0 }
 0x3a7   :  { %v420_v3 = vadd.f32 %v416_v2, %v209_v30  ;;  %v1234_v5 = vpop.f32.mrb[5].mxu0 }
 0x3a9   :  { %v421_v6 = vmul.f32 %v420_v3, %v1543_v39 }
 0x3ab   :  { %1383 = vtanh.f32 %v421_v6 }
 0x3b5   :  { %v1384_v7 = vpop.eup %1383 }
 0x3b6   :  { %v423_v8 = vmul.f32 %v1384_v7, %v1543_v39 }
 0x3b8   :  { %v424_v9 = vadd.f32 %v423_v8, %v1556_v53 }
 0x3ba   :  { %427 = vrot.lane.b32.xlu0 %v424_v9, %s1415_s1  ;;  %v425_v13 = vmul.f32 %v424_v9, %v338_v60 }
 0x42c   :  { %v428_v10 = vpop.permute.xlu0 %427 }
 0x42d   :  { %v430_v11 = vmul.f32 %v428_v10, %v424_v9 }
 0x42f   :  { %432 = vrot.lane.b32.xlu1 %v430_v11, %s1416_s2 }
 0x4a1   :  { %v433_v14 = vpop.permute.xlu1 %432 }
 0x4a2   :  { %v435_v15 = vadd.f32 %v433_v14, %v425_v13 }
 0x4a4   :  { %1385 = vtanh.f32 %v435_v15 }
 0x4ae   :  { %v1386_v16 = vpop.eup %1385 }
 0x4af   :  { %438 = vrot.lane.b32.xlu0 %v1386_v16, %s1415_s1 }
 0x521   :  { %v439_v18 = vpop.permute.xlu0 %438 }
 0x522   :  { %v441_v19 = vmul.f32 %v439_v18, %v424_v9 }
 0x524   :  { %443 = vrot.lane.b32.xlu1 %v441_v19, %s1416_s2 }
 0x596   :  { %v444_v20 = vpop.permute.xlu1 %443 }
 0x597   :  { %1244 = vmatmul.mubr.msk.f32.vlgmr.msra.gmra.mrb[8].mxu1 %vm249_vm5, %v444_v20 }
 0x598   :  { %1345 = vmatpush3.bf16.msra.mxu1 %v1470_v12  ;;  %1265 = vmatprep.mubr.msk.f32.mxu1 %vm1412_vm1, %v1413_v4 }
 0x599   :  { %1346 = vmatprep.subr.bf16.mxu1 %v1411_v0 }
 0x59c   :  { %1348 = vmatpush3.bf16.msra.mxu1 %v1488_v17 }
 0x59d   :  { %1355 = vmatprep.subr.bf16.mxu1 %v1411_v0 }
 0x66a   :  { %v513_v21 = vpop.f32.mrb[8].mxu1 }
 0x66b   :  { %v517_v22 = vadd.f32 %v513_v21, %v1539_v37  ;;  %v1245_v23 = vpop.f32.mrb[9].mxu1 }
 0x66d   :  { %v518_v24 = vmul.f32 %v517_v22, %v1543_v39 }
 0x66f   :  { %1387 = vtanh.f32 %v518_v24 }
 0x679   :  { %v1388_v25 = vpop.eup %1387 }
 0x67a   :  { %v520_v26 = vmul.f32 %v1388_v25, %v1543_v39 }
 0x67c   :  { %v521_v27 = vadd.f32 %v520_v26, %v1556_v53 }
 0x67e   :  { %524 = vrot.lane.b32.xlu0 %v521_v27, %s1415_s1  ;;  %v522_v30 = vmul.f32 %v521_v27, %v435_v15 }
 0x6f0   :  { %v525_v28 = vpop.permute.xlu0 %524 }
 0x6f1   :  { %v527_v29 = vmul.f32 %v525_v28, %v521_v27 }
 0x6f3   :  { %529 = vrot.lane.b32.xlu1 %v527_v29, %s1416_s2 }
 0x765   :  { %v530_v31 = vpop.permute.xlu1 %529 }
 0x766   :  { %v532_v32 = vadd.f32 %v530_v31, %v522_v30 }
 0x768   :  { %1389 = vtanh.f32 %v532_v32 }
 0x772   :  { %v1390_v33 = vpop.eup %1389 }
 0x773   :  { %535 = vrot.lane.b32.xlu0 %v1390_v33, %s1415_s1 }
 0x7e5   :  { %v536_v34 = vpop.permute.xlu0 %535 }
 0x7e6   :  { %v538_v36 = vmul.f32 %v536_v34, %v521_v27 }
 0x7e8   :  { %540 = vrot.lane.b32.xlu1 %v538_v36, %s1416_s2 }
 0x85a   :  { %v541_v37 = vpop.permute.xlu1 %540 }
 0x85b   :  { %1255 = vmatmul.mubr.msk.f32.vlgmr.msra.gmra.mrb[6].mxu0 %vm249_vm5, %v541_v37 }
 0x85c   :  { %1351 = vmatpush3.bf16.msra.mxu0 %v1470_v12  ;;  %1276 = vmatprep.mubr.msk.f32.mxu0 %vm1412_vm1, %v1413_v4 }
 0x85d   :  { %1352 = vmatprep.subr.bf16.mxu0 %v1411_v0 }
 0x860   :  { %1354 = vmatpush3.bf16.msra.mxu0 %v1488_v17 }
 0x861   :  { %1361 = vmatprep.subr.bf16.mxu0 %v1411_v0 }
 0x92e   :  { %v610_v38 = vpop.f32.mrb[6].mxu0 }
 0x92f   :  { %v614_v40 = vadd.f32 %v610_v38, %v1537_v35  ;;  %v1256_v41 = vpop.f32.mrb[7].mxu0 }
 0x931   :  { %v615_v42 = vmul.f32 %v614_v40, %v1543_v39 }
 0x933   :  { %1391 = vtanh.f32 %v615_v42 }
 0x93d   :  { %v1392_v43 = vpop.eup %1391 }
 0x93e   :  { %v617_v44 = vmul.f32 %v1392_v43, %v1543_v39 }
 0x940   :  { %v618_v46 = vadd.f32 %v617_v44, %v1556_v53 }
 0x942   :  { %621 = vrot.lane.b32.xlu0 %v618_v46, %s1415_s1  ;;  %v619_v52 = vmul.f32 %v618_v46, %v532_v32 }
 0x9b4   :  { %v622_v48 = vpop.permute.xlu0 %621 }
 0x9b5   :  { %v624_v50 = vmul.f32 %v622_v48, %v618_v46 }
 0x9b7   :  { %626 = vrot.lane.b32.xlu1 %v624_v50, %s1416_s2 }
 0xa29   :  { %v627_v54 = vpop.permute.xlu1 %626 }
 0xa2a   :  { %v629_v55 = vadd.f32 %v627_v54, %v619_v52 }
 0xa2c   :  { %1393 = vtanh.f32 %v629_v55 }
 0xa36   :  { %v1394_v35 = vpop.eup %1393 }
 0xa37   :  { %632 = vrot.lane.b32.xlu0 %v1394_v35, %s1415_s1 }
 0xaa9   :  { %v633_v56 = vpop.permute.xlu0 %632 }
 0xaaa   :  { %v635_v57 = vmul.f32 %v633_v56, %v618_v46 }
 0xaac   :  { %637 = vrot.lane.b32.xlu1 %v635_v57, %s1416_s2 }
 0xb1e   :  { %v638_v58 = vpop.permute.xlu1 %637 }
 0xb1f   :  { %1266 = vmatmul.mubr.msk.f32.vlgmr.msra.gmra.mrb[10].mxu1 %vm249_vm5, %v638_v58 }
 0xb20   :  { %1357 = vmatpush3.bf16.msra.mxu1 %v1470_v12  ;;  %1287 = vmatprep.mubr.msk.f32.mxu1 %vm1412_vm1, %v1413_v4 }
 0xb21   :  { %1358 = vmatprep.subr.bf16.mxu1 %v1411_v0 }
 0xb24   :  { %1360 = vmatpush3.bf16.msra.mxu1 %v1488_v17 }
 0xb25   :  { %1367 = vmatprep.subr.bf16.mxu1 %v1411_v0 }
 0xbf2   :  { %v707_v59 = vpop.f32.mrb[10].mxu1 }
 0xbf3   :  { %v711_v60 = vadd.f32 %v707_v59, %v1548_v47  ;;  %v1267_v61 = vpop.f32.mrb[11].mxu1 }
 0xbf5   :  { %v712_v62 = vmul.f32 %v711_v60, %v1543_v39  ;;  %v1027_v60 = vld [vmem:[%s1680_s3 + $0x18] sm:$0xff] }
 0xbf7   :  { %1395 = vtanh.f32 %v712_v62 }
 0xc01   :  { %v1396_v63 = vpop.eup %1395 }
 0xc02   :  { %v714_v1 = vmul.f32 %v1396_v63, %v1543_v39 }
 0xc04   :  { %v715_v2 = vadd.f32 %v714_v1, %v1556_v53 }
 0xc06   :  { %718 = vrot.lane.b32.xlu0 %v715_v2, %s1415_s1  ;;  %v716_v6 = vmul.f32 %v715_v2, %v629_v55 }
 0xc78   :  { %v719_v3 = vpop.permute.xlu0 %718 }
 0xc79   :  { %v721_v5 = vmul.f32 %v719_v3, %v715_v2  ;;  %v1130_v3 = vld [vmem:[%s1680_s3 + $0x20] ss:$0 sm:$0xff] }
 0xc7b   :  { %723 = vrot.lane.b32.xlu1 %v721_v5, %s1416_s2 }
 0xced   :  { %v724_v7 = vpop.permute.xlu1 %723 }
 0xcee   :  { %v726_v8 = vadd.f32 %v724_v7, %v716_v6 }
 0xcf0   :  { %1397 = vtanh.f32 %v726_v8 }
 0xcfa   :  { %v1398_v47 = vpop.eup %1397 }
 0xcfb   :  { %729 = vrot.lane.b32.xlu0 %v1398_v47, %s1415_s1 }
 0xd6d   :  { %v730_v9 = vpop.permute.xlu0 %729 }
 0xd6e   :  { %v732_v10 = vmul.f32 %v730_v9, %v715_v2 }
 0xd70   :  { %734 = vrot.lane.b32.xlu1 %v732_v10, %s1416_s2 }
 0xde2   :  { %v735_v11 = vpop.permute.xlu1 %734 }
 0xde3   :  { %1277 = vmatmul.mubr.msk.f32.vlgmr.msra.gmra.mrb[8].mxu0 %vm249_vm5, %v735_v11 }
 0xde4   :  { %1363 = vmatpush3.bf16.msra.mxu0 %v1470_v12  ;;  %1298 = vmatprep.mubr.msk.f32.mxu0 %vm1412_vm1, %v1413_v4 }
 0xde5   :  { %1364 = vmatprep.subr.bf16.mxu0 %v1411_v0 }
 0xde8   :  { %1366 = vmatpush3.bf16.msra.mxu0 %v1488_v17 }
 0xeb6   :  { %v804_v13 = vpop.f32.mrb[8].mxu0 }
 0xeb7   :  { %v808_v14 = vadd.f32 %v804_v13, %v1546_v45  ;;  %v1278_v15 = vpop.f32.mrb[9].mxu0 }
 0xeb9   :  { %v809_v16 = vmul.f32 %v808_v14, %v1543_v39 }
 0xebb   :  { %1399 = vtanh.f32 %v809_v16 }
 0xec5   :  { %v1400_v18 = vpop.eup %1399 }
 0xec6   :  { %v811_v19 = vmul.f32 %v1400_v18, %v1543_v39 }
 0xec8   :  { %v812_v20 = vadd.f32 %v811_v19, %v1556_v53 }
 0xeca   :  { %815 = vrot.lane.b32.xlu0 %v812_v20, %s1415_s1  ;;  %v813_v22 = vmul.f32 %v812_v20, %v726_v8 }
 0xf3c   :  { %v816_v12 = vpop.permute.xlu0 %815 }
 0xf3d   :  { %v818_v21 = vmul.f32 %v816_v12, %v812_v20 }
 0xf3f   :  { %820 = vrot.lane.b32.xlu1 %v818_v21, %s1416_s2 }
 0xfb1   :  { %v821_v17 = vpop.permute.xlu1 %820 }
 0xfb2   :  { %v823_v23 = vadd.f32 %v821_v17, %v813_v22 }
 0xfb4   :  { %1401 = vtanh.f32 %v823_v23 }
 0xfbe   :  { %v1402_v45 = vpop.eup %1401 }
 0xfbf   :  { %826 = vrot.lane.b32.xlu0 %v1402_v45, %s1415_s1 }
0x1031   :  { %v827_v24 = vpop.permute.xlu0 %826 }
0x1032   :  { %v829_v25 = vmul.f32 %v827_v24, %v812_v20 }
0x1034   :  { %831 = vrot.lane.b32.xlu1 %v829_v25, %s1416_s2 }
0x10a6   :  { %v832_v26 = vpop.permute.xlu1 %831 }
0x10a7   :  { %1288 = vmatmul.mubr.msk.f32.vlgmr.msra.gmra.mrb[12].mxu1 %vm249_vm5, %v832_v26 }
0x10a8   :  { %1309 = vmatprep.mubr.msk.f32.mxu1 %vm1412_vm1, %v1413_v4 }
0x117a   :  { %v901_v27 = vpop.f32.mrb[12].mxu1 }
0x117b   :  { %v905_v28 = vadd.f32 %v901_v27, %v1552_v51  ;;  %v1289_v29 = vpop.f32.mrb[13].mxu1 }
0x117d   :  { %v906_v30 = vmul.f32 %v905_v28, %v1543_v39 }
0x117f   :  { %1403 = vtanh.f32 %v906_v30 }
0x1189   :  { %v1404_v31 = vpop.eup %1403 }
0x118a   :  { %v908_v32 = vmul.f32 %v1404_v31, %v1543_v39 }
0x118c   :  { %v909_v33 = vadd.f32 %v908_v32, %v1556_v53 }
0x118e   :  { %912 = vrot.lane.b32.xlu0 %v909_v33, %s1415_s1  ;;  %v910_v37 = vmul.f32 %v909_v33, %v823_v23 }
0x1200   :  { %v913_v34 = vpop.permute.xlu0 %912 }
0x1201   :  { %v915_v36 = vmul.f32 %v913_v34, %v909_v33 }
0x1203   :  { %917 = vrot.lane.b32.xlu1 %v915_v36, %s1416_s2 }
0x1275   :  { %v918_v4 = vpop.permute.xlu1 %917 }
0x1276   :  { %v920_v38 = vadd.f32 %v918_v4, %v910_v37 }
0x1278   :  { %1405 = vtanh.f32 %v920_v38 }
0x1282   :  { %v1406_v51 = vpop.eup %1405 }
0x1283   :  { %923 = vrot.lane.b32.xlu0 %v1406_v51, %s1415_s1 }
0x12f5   :  { %v924_v40 = vpop.permute.xlu0 %923 }
0x12f6   :  { %v926_v41 = vmul.f32 %v924_v40, %v909_v33 }
0x12f8   :  { %928 = vrot.lane.b32.xlu1 %v926_v41, %s1416_s2 }
0x136a   :  { %v929_v42 = vpop.permute.xlu1 %928 }
0x136b   :  { %1299 = vmatmul.mubr.msk.f32.vlgmr.msra.gmra.mrb[10].mxu0 %vm249_vm5, %v929_v42 }
0x143e   :  { %v998_v43 = vpop.f32.mrb[10].mxu0 }
0x143f   :  { %v1002_v44 = vadd.f32 %v998_v43, %v1550_v49  ;;  %v1300_v46 = vpop.f32.mrb[11].mxu0  ;;  %v1024_v49 = vld [vmem:[%s1680_s3] sm:$0xff] }
0x1441   :  { %v1003_v48 = vmul.f32 %v1002_v44, %v1543_v39 }
0x1443   :  { %1407 = vtanh.f32 %v1003_v48 }
0x144d   :  { %v1408_v50 = vpop.eup %1407 }
0x144e   :  { %v1005_v52 = vmul.f32 %v1408_v50, %v1543_v39  ;;  %v1025_v39 = vld [vmem:[%s1680_s3 + $0x8] sm:$0xff] }
0x144f   :  { %v1368_v59 = vpack.c.bf16 %v1025_v39, %v1024_v49 }
0x1450   :  { %v1006_v54 = vadd.f32 %v1005_v52, %v1556_v53  ;;  %v1026_v53 = vld [vmem:[%s1680_s3 + $0x10] sm:$0xff] }
0x1451   :  { %1369 = vmatpush3.bf16.msra.mxu1 %v1368_v59  ;;  %v1371_v61 = vpack.c.bf16 %v1027_v60, %v1026_v53 }
0x1452   :  { %1009 = vrot.lane.b32.xlu0 %v1006_v54, %s1415_s1  ;;  %v1007_v56 = vmul.f32 %v1006_v54, %v920_v38  ;;  %1370 = vmatprep.subr.bf16.mxu1 %v1411_v0 }
0x1455   :  { %1372 = vmatpush3.bf16.msra.mxu1 %v1371_v61 }
0x14c4   :  { %v1010_v55 = vpop.permute.xlu0 %1009 }
0x14c5   :  { %v1012_v35 = vmul.f32 %v1010_v55, %v1006_v54 }
0x14c7   :  { %1014 = vrot.lane.b32.xlu1 %v1012_v35, %s1416_s2 }
0x1539   :  { %v1015_v57 = vpop.permute.xlu1 %1014 }
0x153a   :  { %v1017_v58 = vadd.f32 %v1015_v57, %v1007_v56 }
0x153c   :  { %1409 = vtanh.f32 %v1017_v58 }
0x1546   :  { %v1410_v62 = vpop.eup %1409 }
0x1547   :  { %1020 = vrot.lane.b32.xlu0 %v1410_v62, %s1415_s1 }
0x15b9   :  { %v1021_v63 = vpop.permute.xlu0 %1020 }
0x15ba   :  { %v1023_v1 = vmul.f32 %v1021_v63, %v1006_v54 }
0x15bc   :  { %1034 = vrot.lane.b32.xlu1 %v1023_v1, %s1416_s2 }
0x162e   :  { %v1035_v2 = vpop.permute.xlu1 %1034 }
0x162f   :  { %1310 = vmatmul.mubr.msk.f32.vlgmr.msra.gmra.mrb[14].mxu1 %vm249_vm5, %v1035_v2 }
0x1702   :  { %v1104_v5 = vpop.f32.mrb[14].mxu1 }
0x1703   :  { %v1105_v6 = vadd.f32 %v1130_v3, %v1104_v5  ;;  %v1311_v7 = vpop.f32.mrb[15].mxu1 }
0x1705   :  { %1108 = vst [vmem:[%s1681_s4] sm:$0xff] %v1105_v6 }

</bundles_post_ra>
